<compile_context>
chip_gen: v7x
topology: tpu7x:2x2x1
jax: 0.10.0
libtpu: 0.0.40
codegen_flags: <defaults>
</compile_context>

<pallas_src>
import functools

import jax
import jax.numpy as jnp
from jax import lax
from jax.experimental import pallas as pl
from jax.experimental.pallas import tpu as pltpu


def _linear_dropout_kernel(x_ref, w_ref, b_ref, u_ref, o_ref, acc_ref, *,
                           dropout_p):
    k = pl.program_id(2)

    @pl.when(k == 0)
    def _init():
        acc_ref[...] = jnp.zeros_like(acc_ref)

    # x tile (tm, tk) @ w tile (tn, tk) contracted over K  ->  (tm, tn) on MXU.
    acc_ref[...] += lax.dot_general(
        x_ref[...], w_ref[...],
        dimension_numbers=(((1,), (1,)), ((), ())),
        preferred_element_type=jnp.float32,
    )

    @pl.when(k == pl.num_programs(2) - 1)
    def _finalize():
        y = acc_ref[...] + b_ref[...].astype(jnp.float32)   # (1, tn) broadcast
        if dropout_p > 0.0:
            # keep with probability 1 - p; survivors scaled by 1/(1-p).
            keep = u_ref[...] >= jnp.float32(dropout_p)
            y = jnp.where(keep, y * jnp.float32(1.0 / (1.0 - dropout_p)),
                          jnp.float32(0.0))
        o_ref[...] = y.astype(o_ref.dtype)


def _round_up(v, m):
    return (v + m - 1) // m * m


def linear_with_dropout(x, weight, bias, *, key=None, dropout_p=0.1,
                        training=True, tm=128, tn=128, tk=512):
    """x: (M, K); weight: (N, K) (PyTorch nn.Linear layout); bias: (N,)."""
    M, K = x.shape
    N, K2 = weight.shape
    assert K == K2, "weight / input dim mismatch"

    p = float(dropout_p) if training else 0.0
    if p >= 1.0:  # torch.nn.Dropout(1.0) zeros everything; avoid inf scale.
        return jnp.zeros((M, N), x.dtype)
    if p > 0.0 and key is None:
        raise ValueError("key is required when dropout is active")

    # Tile sizes: clip to (padded) problem size, keep last dims lane-dense.
    tm = min(tm, _round_up(M, 8))
    tn = min(tn, _round_up(N, 128))
    tk = min(tk, _round_up(K, 128))
    Mp, Np, Kp = _round_up(M, tm), _round_up(N, tn), _round_up(K, tk)

    x_p = x if (Mp, Kp) == (M, K) else jnp.pad(x, ((0, Mp - M), (0, Kp - K)))
    w_p = (weight if (Np, Kp) == (N, K)
           else jnp.pad(weight, ((0, Np - N), (0, Kp - K))))
    b_p = (bias if Np == N else jnp.pad(bias, (0, Np - N))).reshape(1, Np)

    if p > 0.0:
        u = jax.random.uniform(key, (Mp, Np), jnp.float32)
    else:
        u = jnp.zeros((Mp, Np), jnp.float32)

    grid = (Mp // tm, Np // tn, Kp // tk)
    kernel = functools.partial(_linear_dropout_kernel, dropout_p=p)

    out = pl.pallas_call(
        kernel,
        out_shape=jax.ShapeDtypeStruct((Mp, Np), x.dtype),
        grid_spec=pltpu.PrefetchScalarGridSpec(
            num_scalar_prefetch=0,
            grid=grid,
            in_specs=[
                pl.BlockSpec((tm, tk), lambda i, j, k: (i, k)),   # x
                pl.BlockSpec((tn, tk), lambda i, j, k: (j, k)),   # weight (N,K)
                pl.BlockSpec((1, tn), lambda i, j, k: (0, j)),    # bias
                pl.BlockSpec((tm, tn), lambda i, j, k: (i, j)),   # dropout rand
            ],
            out_specs=pl.BlockSpec((tm, tn), lambda i, j, k: (i, j)),
            scratch_shapes=[pltpu.VMEM((tm, tn), jnp.float32)],
        ),
        compiler_params=pltpu.CompilerParams(
            dimension_semantics=("parallel", "parallel", "arbitrary")),
    )(x_p, w_p, b_p, u)

    return out[:M, :N] if (Mp, Np) != (M, N) else out


def init_linear_params(key, input_dim, output_dim):
    """Deterministic nn.Linear-style init: U(-1/sqrt(in), 1/sqrt(in))."""
    kw, kb = jax.random.split(key)
    bound = 1.0 / (input_dim ** 0.5)
    weight = jax.random.uniform(
        kw, (output_dim, input_dim), jnp.float32, -bound, bound)
    bias = jax.random.uniform(
        kb, (output_dim,), jnp.float32, -bound, bound)
    return weight, bias


if __name__ == "__main__":
    key = jax.random.PRNGKey(0)
    k_x, k_params, k_drop = jax.random.split(key, 3)

    batch, input_dim, output_dim = 16, 32, 64
    dropout_prob = 0.1

    x = jax.random.normal(k_x, (batch, input_dim), jnp.float32)
    weight, bias = init_linear_params(k_params, input_dim, output_dim)
    ref = x @ weight.T + bias

    # Eval mode (dropout off): exact match against the linear reference.
    out_eval = linear_with_dropout(
        x, weight, bias, key=k_drop, dropout_p=dropout_prob, training=False)
    out_eval = jax.block_until_ready(out_eval)
    assert out_eval.shape == (batch, output_dim)
    assert float(jnp.max(jnp.abs(out_eval - ref))) < 1e-4

    # Train mode: kept elements equal the scaled linear output.
    out = linear_with_dropout(
        x, weight, bias, key=k_drop, dropout_p=dropout_prob, training=True)
    out = jax.block_until_ready(out)
    assert out.shape == (batch, output_dim)
    assert out.dtype == jnp.float32

    kept = out != 0.0
    scale = 1.0 / (1.0 - dropout_prob)
    max_err = jnp.max(jnp.abs(jnp.where(kept, out - ref * scale, 0.0)))
    assert float(max_err) < 1e-4, f"mismatch on kept elements: {max_err}"

    print("KERNEL_OK")
</pallas_src>

<mosaic_0001>
module attributes {stable_mosaic.version = 11 : i64} {
  func.func @_linear_dropout_kernel(%arg0: i32, %arg1: i32, %arg2: i32, %arg3: memref<16x128xf32, #tpu.memory_space<vmem>>, %arg4: memref<128x128xf32, #tpu.memory_space<vmem>>, %arg5: memref<1x128xf32, #tpu.memory_space<vmem>>, %arg6: memref<16x128xf32, #tpu.memory_space<vmem>>, %arg7: memref<16x128xf32, #tpu.memory_space<vmem>>, %arg8: memref<16x128xf32, #tpu.memory_space<vmem>>) attributes {dimension_semantics = [#tpu.dimension_semantics<parallel>, #tpu.dimension_semantics<parallel>, #tpu.dimension_semantics<arbitrary>], iteration_bounds = array<i64: 1, 1, 1>, scalar_prefetch = 0 : i64, scratch_operands = 1 : i64, tpu.core_type = #tpu.core_type<tc>, window_params = [{transform_indices = @transform_0, window_bounds = array<i64: 16, 128>}, {transform_indices = @transform_1, window_bounds = array<i64: 128, 128>}, {transform_indices = @transform_2, window_bounds = array<i64: 1, 128>}, {transform_indices = @transform_3, window_bounds = array<i64: 16, 128>}, {transform_indices = @transform_4, window_bounds = array<i64: 16, 128>}]} {
    %c0_i32 = arith.constant 0 : i32
    %0 = arith.cmpi eq, %arg2, %c0_i32 : i32
    %1 = arith.extui %0 : i1 to i32
    %c0_i32_0 = arith.constant 0 : i32
    %2 = arith.cmpi ne, %1, %c0_i32_0 : i32
    scf.if %2 {
      %cst_10 = arith.constant 0.000000e+00 : f32
      %12 = vector.broadcast %cst_10 : f32 to vector<16x128xf32>
      %c0_11 = arith.constant 0 : index
      %c0_12 = arith.constant 0 : index
      %13 = vector.load %arg8[%c0_11, %c0_12] : memref<16x128xf32, #tpu.memory_space<vmem>>, vector<16x128xf32>
      tpu.vector_store %arg8[%c0_11, %c0_12], %12 {strides = array<i32>} : memref<16x128xf32, #tpu.memory_space<vmem>>, vector<16x128xf32>,
    } else {
    }
    %c0 = arith.constant 0 : index
    %c0_1 = arith.constant 0 : index
    %3 = vector.load %arg8[%c0, %c0_1] : memref<16x128xf32, #tpu.memory_space<vmem>>, vector<16x128xf32>
    %c0_2 = arith.constant 0 : index
    %c0_3 = arith.constant 0 : index
    %4 = vector.load %arg3[%c0_2, %c0_3] : memref<16x128xf32, #tpu.memory_space<vmem>>, vector<16x128xf32>
    %c0_4 = arith.constant 0 : index
    %c0_5 = arith.constant 0 : index
    %5 = vector.load %arg4[%c0_4, %c0_5] : memref<128x128xf32, #tpu.memory_space<vmem>>, vector<128x128xf32>
    %cst = arith.constant dense<0.000000e+00> : vector<16x128xf32>
    %6 = tpu.matmul %4, %5, %cst {dimension_numbers = #tpu.dot_dimension_numbers<[1], [1], [0], [0], [0, 0, 1, 0], [], []>} : vector<16x128xf32>, vector<128x128xf32>, vector<16x128xf32> -> vector<16x128xf32>
    %7 = arith.addf %3, %6 : vector<16x128xf32>
    %c0_6 = arith.constant 0 : index
    %c0_7 = arith.constant 0 : index
    %8 = vector.load %arg8[%c0_6, %c0_7] : memref<16x128xf32, #tpu.memory_space<vmem>>, vector<16x128xf32>
    tpu.vector_store %arg8[%c0_6, %c0_7], %7 {strides = array<i32>} : memref<16x128xf32, #tpu.memory_space<vmem>>, vector<16x128xf32>,
    %c0_i32_8 = arith.constant 0 : i32
    %9 = arith.cmpi eq, %arg2, %c0_i32_8 : i32
    %10 = arith.extui %9 : i1 to i32
    %c0_i32_9 = arith.constant 0 : i32
    %11 = arith.cmpi ne, %10, %c0_i32_9 : i32
    scf.if %11 {
      %c0_10 = arith.constant 0 : index
      %c0_11 = arith.constant 0 : index
      %12 = vector.load %arg8[%c0_10, %c0_11] : memref<16x128xf32, #tpu.memory_space<vmem>>, vector<16x128xf32>
      %c0_12 = arith.constant 0 : index
      %c0_13 = arith.constant 0 : index
      %13 = vector.load %arg5[%c0_12, %c0_13] : memref<1x128xf32, #tpu.memory_space<vmem>>, vector<1x128xf32>
      %14 = vector.broadcast %13 : vector<1x128xf32> to vector<16x128xf32>
      %15 = arith.addf %12, %14 : vector<16x128xf32>
      %c0_14 = arith.constant 0 : index
      %c0_15 = arith.constant 0 : index
      %16 = vector.load %arg7[%c0_14, %c0_15] : memref<16x128xf32, #tpu.memory_space<vmem>>, vector<16x128xf32>
      tpu.vector_store %arg7[%c0_14, %c0_15], %15 {strides = array<i32>} : memref<16x128xf32, #tpu.memory_space<vmem>>, vector<16x128xf32>,
    } else {
    }
    return
  }
  func.func @transform_0(%arg0: i32, %arg1: i32, %arg2: i32) -> (i32, i32) {
    %c0_i32 = arith.constant 0 : i32
    return %arg0, %arg2 : i32, i32
  }
  func.func @transform_1(%arg0: i32, %arg1: i32, %arg2: i32) -> (i32, i32) {
    %c0_i32 = arith.constant 0 : i32
    return %arg1, %arg2 : i32, i32
  }
  func.func @transform_2(%arg0: i32, %arg1: i32, %arg2: i32) -> (i32, i32) {
    %c0_i32 = arith.constant 0 : i32
    %c0_i32_0 = arith.constant 0 : i32
    return %c0_i32, %arg1 : i32, i32
  }
  func.func @transform_3(%arg0: i32, %arg1: i32, %arg2: i32) -> (i32, i32) {
    %c0_i32 = arith.constant 0 : i32
    return %arg0, %arg1 : i32, i32
  }
  func.func @transform_4(%arg0: i32, %arg1: i32, %arg2: i32) -> (i32, i32) {
    %c0_i32 = arith.constant 0 : i32
    return %arg0, %arg1 : i32, i32
  }
}

</mosaic_0001>

<bundles_post_ra>
// kernel: tpu_custom_call.1
= control target key start
LH: loop header
LB: loop body
LE: loop exit
PB: predicated region body
PF: predicated region fallthrough
CT: control target
= control target key end

     0   :  { %9 = vsyncpa [#allocation4], 0  ;;  %s485_s0 = inlined_call_operand.hbm [shape: f32[16,128], index: 0, kind: input, shape index: {}]   ;;  %s486_s1 = inlined_call_operand.hbm [shape: f32[128,128], index: 1, kind: input, shape index: {}]   ;;  %s487_s2 = inlined_call_operand.vmem [shape: f32[1,128], index: 2, kind: input, shape index: {}]   ;;  %s488_s3 = inlined_call_operand.hbm [shape: f32[16,128], index: 3, kind: input, shape index: {}]   ;;  %s489_s4 = inlined_call_operand.hbm [shape: f32[16,128], index: 4, kind: output, shape index: {}]  }
   0x1   :  { %10 = vsyncpa [#allocation7], 0 }
   0x2   :  { %11 = vsyncpa [#allocation5], 0  ;;  %s384_s15 = smov [#allocation6]   ;;  %s385_s17 = smov [#allocation3]  }
   0x3   :  { %s29_s16 = sshll.u32 %s384_s15, 4  ;;  %s17_s18 = sshll.u32 %s385_s17, 4  ;;  %s30_s16 = int_to_ptr.vmem [resolvable:$true] %s29_s16  ;;  %s415_s18 = int_to_ptr.vmem [resolvable:$true] %s17_s18 }
   0x4   :  { %s290_s21 = scalar_lea.hbm %s486_s1, 2048 }
   0x5   :  { %p291_p0 = scmp.ne.s32.totalorder %s486_s1, %s290_s21  ;;  %p294_p1 = scmp.lt.u32.totalorder %s290_s21, %s486_s1 }
   0x7   :  { %p296_p2 = pnand %p294_p1, %p291_p0 }
   0x9   :  { %299 = shalt.err (!%p296_p2)
}
   0xa   :  { %s300_s26 = scalar_lea.vmem %s30_s16, 2048  ;;  %p305_p4 = scmp.lt.s32.totalorder %s30_s16, %s30_s16 }
   0xb   :  { %p301_p3 = scmp.ne.s32.totalorder %s30_s16, %s300_s26  ;;  %p306_p5 = scmp.lt.s32.totalorder %s300_s26, %s300_s26 }
   0xd   :  { %p307_p6 = por %p306_p5, %p305_p4 }
   0xf   :  { %p308_p7 = pnand %p307_p6, %p301_p3 }
  0x11   :  { %311 = shalt.err (!%p308_p7)
}
  0x12   :  { %s386_s27 = smov 128   ;;  %s387_s28 = smov 8  }
  0x13   :  { %35 = dma.hbm_to_vmem [thread:$0]  %s486_s1, 2048, %s30_s16, [#allocation7], %s386_s27, %s386_s27, %s387_s28  }
  0x14   :  { %s312_s7 = scalar_lea.hbm %s485_s0, 256 }
  0x15   :  { %p313_p8 = scmp.ne.s32.totalorder %s485_s0, %s312_s7  ;;  %p316_p9 = scmp.lt.u32.totalorder %s312_s7, %s485_s0 }
  0x17   :  { %p318_p10 = pnand %p316_p9, %p313_p8 }
  0x19   :  { %321 = shalt.err (!%p318_p10)
}
  0x1a   :  { %s322_s12 = scalar_lea.vmem %s415_s18, 256  ;;  %p327_p12 = scmp.lt.s32.totalorder %s415_s18, %s415_s18 }
  0x1b   :  { %p323_p11 = scmp.ne.s32.totalorder %s415_s18, %s322_s12  ;;  %p328_p13 = scmp.lt.s32.totalorder %s322_s12, %s322_s12 }
  0x1d   :  { %p329_p0 = por %p328_p13, %p327_p12 }
  0x1f   :  { %p330_p1 = pnand %p329_p0, %p323_p11 }
  0x21   :  { %333 = shalt.err (!%p330_p1)
}
  0x22   :  { %23 = dma.hbm_to_vmem [thread:$0]  %s485_s0, 256, %s415_s18, [#allocation4], %s386_s27, %s386_s27, %s387_s28  }
  0x23   :  { %s388_s14 = smov [#allocation8]   ;;  %s334_s19 = scalar_lea.hbm %s488_s3, 256 }
  0x24   :  { %s43_s15 = sshll.u32 %s388_s14, 4  ;;  %p335_p2 = scmp.ne.s32.totalorder %s488_s3, %s334_s19  ;;  %s44_s15 = int_to_ptr.vmem [resolvable:$true] %s43_s15 }
  0x25   :  { %p338_p3 = scmp.lt.u32.totalorder %s334_s19, %s488_s3 }
  0x27   :  { %p340_p4 = pnand %p338_p3, %p335_p2 }
  0x29   :  { %343 = shalt.err (!%p340_p4)
}
  0x2a   :  { %s344_s24 = scalar_lea.vmem %s44_s15, 256  ;;  %p349_p6 = scmp.lt.s32.totalorder %s44_s15, %s44_s15 }
  0x2b   :  { %p345_p5 = scmp.ne.s32.totalorder %s44_s15, %s344_s24  ;;  %p350_p7 = scmp.lt.s32.totalorder %s344_s24, %s344_s24 }
  0x2d   :  { %p351_p8 = por %p350_p7, %p349_p6 }
  0x2f   :  { %p352_p9 = pnand %p351_p8, %p345_p5 }
  0x31   :  { %355 = shalt.err (!%p352_p9)
}
  0x32   :  { %49 = dma.hbm_to_vmem [thread:$0]  %s488_s3, 256, %s44_s15, [#allocation7], %s386_s27, %s386_s27, %s387_s28  }
  0x33   :  { %378 = dma.done.wait [#allocation4], 256  }
  0x34   :  { %379 = vsyncadd [#allocation4], 4294967040 }
  0x35   :  { %380 = dma.done.wait [#allocation7], 2304  }
  0x36   :  { %381 = vsyncadd [#allocation7], 4294964992  ;;  %v69_v0 = vld [vmem:[#allocation6] sm:$0xff]  ;;  %v70_v1 = vld [vmem:[#allocation6 + $0x8] sm:$0xff]  ;;  %s389_s26 = smov [#allocation9]  }
  0x37   :  { %v71_v2 = vld [vmem:[#allocation6 + $0x10] sm:$0xff]  ;;  %v252_v3 = vpack.c.bf16 %v70_v1, %v69_v0  ;;  %v72_v4 = vld [vmem:[#allocation6 + $0x18] sm:$0xff]  ;;  %v73_v7 = vld [vmem:[#allocation6 + $0x20] sm:$0xff]  ;;  %s185_s29 = sshll.u32 %s389_s26, 4  ;;  %s186_s29 = int_to_ptr.vmem [resolvable:$true] %s185_s29 }
  0x38   :  { %v256_v5 = vpack.c.bf16 %v72_v4, %v71_v2  ;;  %v67_v6 = vld [vmem:[#allocation3] sm:$0xff]  ;;  %v74_v8 = vld [vmem:[#allocation6 + $0x28] sm:$0xff]  ;;  %v76_v11 = vld [vmem:[#allocation6 + $0x38] sm:$0xff]  ;;  %s356_s30 = scalar_lea.vmem %s186_s29, 256  ;;  %p361_p11 = scmp.lt.s32.totalorder %s186_s29, %s186_s29 }
  0x39   :  { %253 = vmatprep.subr.bf16.mxu0 %v252_v3  ;;  %249 = vmatprep.mubr.f32.mxu0 %v67_v6  ;;  %v260_v9 = vpack.c.bf16 %v74_v8, %v73_v7  ;;  %v75_v10 = vld [vmem:[#allocation6 + $0x30] sm:$0xff]  ;;  %v77_v13 = vld [vmem:[#allocation6 + $0x40] sm:$0xff]  ;;  %v78_v14 = vld [vmem:[#allocation6 + $0x48] sm:$0xff]  ;;  %p357_p10 = scmp.ne.s32.totalorder %s186_s29, %s356_s30  ;;  %p362_p12 = scmp.lt.s32.totalorder %s356_s30, %s356_s30 }
  0x3a   :  { %255 = vmatpush3.bf16.xpose.msra.mxu0 %v252_v3  ;;  %v264_v12 = vpack.c.bf16 %v76_v11, %v75_v10  ;;  %v268_v15 = vpack.c.bf16 %v78_v14, %v77_v13  ;;  %v79_v16 = vld [vmem:[#allocation6 + $0x50] sm:$0xff]  ;;  %v80_v17 = vld [vmem:[#allocation6 + $0x58] sm:$0xff]  ;;  %v81_v19 = vld [vmem:[#allocation6 + $0x60] sm:$0xff] }
  0x3b   :  { %257 = vmatprep.subr.bf16.mxu0 %v256_v5  ;;  %v272_v18 = vpack.c.bf16 %v80_v17, %v79_v16  ;;  %v82_v20 = vld [vmem:[#allocation6 + $0x68] sm:$0xff]  ;;  %v83_v22 = vld [vmem:[#allocation6 + $0x70] sm:$0xff]  ;;  %v84_v23 = vld [vmem:[#allocation6 + $0x78] sm:$0xff]  ;;  %p363_p13 = por %p362_p12, %p361_p11 }
  0x3c   :  { %v276_v21 = vpack.c.bf16 %v82_v20, %v81_v19  ;;  %v280_v24 = vpack.c.bf16 %v84_v23, %v83_v22  ;;  %v68_v25 = vld [vmem:[#allocation3 + $0x8] sm:$0xff]  ;;  %v198_v26 = vld [vmem:[%s487_s2] ss:$0 sm:$0xff] }
  0x3d   :  { %p364_p0 = pnand %p363_p13, %p357_p10 }
  0x42   :  { %259 = vmatpush3.bf16.xpose.msra.mxu0 %v256_v5 }
  0x43   :  { %261 = vmatprep.subr.bf16.mxu0 %v260_v9 }
  0x4a   :  { %263 = vmatpush3.bf16.xpose.msra.mxu0 %v260_v9 }
  0x4b   :  { %265 = vmatprep.subr.bf16.mxu0 %v264_v12 }
  0x52   :  { %267 = vmatpush3.bf16.xpose.msra.mxu0 %v264_v12 }
  0x53   :  { %269 = vmatprep.subr.bf16.mxu0 %v268_v15 }
  0x5a   :  { %271 = vmatpush3.bf16.xpose.msra.mxu0 %v268_v15 }
  0x5b   :  { %273 = vmatprep.subr.bf16.mxu0 %v272_v18 }
  0x62   :  { %275 = vmatpush3.bf16.xpose.msra.mxu0 %v272_v18 }
  0x63   :  { %277 = vmatprep.subr.bf16.mxu0 %v276_v21 }
  0x6a   :  { %279 = vmatpush3.bf16.xpose.msra.mxu0 %v276_v21 }
  0x6b   :  { %281 = vmatprep.subr.bf16.mxu0 %v280_v24 }
  0x72   :  { %283 = vmatpush3.bf16.xpose.msra.mxu0 %v280_v24 }
  0x79   :  { %250 = vmatmul.mubr.f32.vlgmr.msra.gmra.mrb[0].mxu0 %v68_v25 }
 0x14c   :  { %v251_v27 = vpop.f32.mrb[0].mxu0 }
 0x14d   :  { %v177_v28 = vadd.f32 %v251_v27, %v198_v26  ;;  %v151_v29 = vpop.f32.mrb[1].mxu0 }
 0x14e   :  { %v176_v30 = vadd.f32 %v198_v26, %v151_v29 }
 0x14f   :  { %179 = vst [vmem:[#allocation9 + $0x8] sm:$0xff] %v177_v28 }
 0x150   :  { %178 = vst [vmem:[#allocation9] sm:$0xff] %v176_v30 }
 0x151   :  { %367 = shalt.err (!%p364_p0)
}
 0x152   :  { %s368_s2 = scalar_lea.hbm %s489_s4, 256 }
 0x153   :  { %p369_p1 = scmp.ne.s32.totalorder %s489_s4, %s368_s2  ;;  %p372_p2 = scmp.lt.u32.totalorder %s368_s2, %s489_s4 }
 0x155   :  { %p374_p3 = pnand %p372_p2, %p369_p1 }
 0x157   :  { %377 = shalt.err (!%p374_p3)
}
 0x158   :  { %191 = dma.vmem_to_hbm [thread:$0]  %s186_s29, 256, %s489_s4, [#allocation5], %s386_s27, %s386_s27, %s387_s28  }
 0x159   :  { %382 = dma.done.wait [#allocation5], 256  }
 0x15a   :  { %383 = vsyncadd [#allocation5], 4294967040 }
 0x15b   :  { %195 = vsyncpa [#allocation4], 1 }
 0x15c   :  { %196 = vsyncpa [#allocation7], 1 }
 0x15d   :  { %197 = vsyncpa [#allocation5], 1 }

</bundles_post_ra>
